<compile_context>
chip_gen: v6e
topology: v6e:2x2x1
jax: 0.10.0
libtpu: 0.0.40
codegen_flags: <defaults>
</compile_context>

<pallas_src>
import functools

import jax
import jax.numpy as jnp
from jax.experimental import pallas as pl
from jax.experimental.pallas import tpu as pltpu

BN_EPS = 1e-5


def _fused_kernel(x_ref, wt_ref, gb_ref, o_ref,
                  sum_ref, ssq_ref, scale_ref, shift_ref, *, count, eps):
    # x_ref:  (1, C_in, L_tile)   NCL tile of the input
    # wt_ref: (C_out, C_in)       block-diagonal grouped-conv weight (pre-transposed)
    # gb_ref: (C_out, 2)          column 0 = gamma, column 1 = beta
    # o_ref:  (1, C_out, L_tile)
    # scratch: per-channel f32 (C_out, 1) sum / sum-of-squares / scale / shift
    phase = pl.program_id(0)
    n = pl.program_id(1)
    l = pl.program_id(2)
    n_last = pl.num_programs(1) - 1
    l_last = pl.num_programs(2) - 1

    @pl.when(jnp.logical_and(phase == 0, jnp.logical_and(n == 0, l == 0)))
    def _init():
        sum_ref[...] = jnp.zeros_like(sum_ref)
        ssq_ref[...] = jnp.zeros_like(ssq_ref)

    # Block-diagonal grouped 1x1 conv: one dense (C_out, C_in) @ (C_in, L_tile) on the MXU.
    x = x_ref[0]                                                        # (C_in, L_tile)
    y = jnp.dot(wt_ref[...], x, preferred_element_type=jnp.float32)    # (C_out, L_tile)

    @pl.when(phase == 0)
    def _accumulate():
        sum_ref[...] += jnp.sum(y, axis=1, keepdims=True)
        ssq_ref[...] += jnp.sum(y * y, axis=1, keepdims=True)

    @pl.when(jnp.logical_and(phase == 0, jnp.logical_and(n == n_last, l == l_last)))
    def _finalize():
        inv_count = 1.0 / count
        mean = sum_ref[...] * inv_count                                 # (C_out, 1)
        var = jnp.maximum(ssq_ref[...] * inv_count - mean * mean, 0.0)  # biased var
        rstd = jax.lax.rsqrt(var + eps)
        gamma = gb_ref[:, 0:1]
        beta = gb_ref[:, 1:2]
        scale_ref[...] = gamma * rstd
        shift_ref[...] = beta - mean * gamma * rstd

    @pl.when(phase == 1)
    def _normalize_store():
        o_ref[0] = jnp.maximum(
            y * scale_ref[...] + shift_ref[...], 0.0).astype(o_ref.dtype)


def _choose_l_tile(L, C_in, C_out, budget_bytes):
    """Full L if it fits the VMEM budget, else the largest multiple of 128 dividing L."""
    per_l = (C_in + C_out) * 4 * 2        # double-buffered x + y columns, f32
    if L <= 128 or L * per_l <= budget_bytes:
        return L
    t = max(128, (budget_bytes // per_l) // 128 * 128)
    while t >= 128:
        if L % t == 0:
            return t
        t -= 128
    return L


def group_conv1x1_block(x, weight, bias, gamma, beta, *, groups,
                        l_tile=None, vmem_budget_bytes=8 * 1024 * 1024):
    """x: (N, C_in, L); weight: (C_out, C_in//groups, 1); bias/gamma/beta: (C_out,).

    Equivalent to Conv1d(k=1, groups=groups) -> BatchNorm1d (training batch stats) -> ReLU.
    `bias` is accepted for API parity but unused: it cancels exactly under training-mode BN.
    """
    del bias  # exact no-op under training-mode BatchNorm (cancels in y - mean)
    N, C_in, L = x.shape
    C_out = weight.shape[0]
    Cin_g = C_in // groups
    Cout_g = C_out // groups

    # Block-diagonal weight, already transposed to (C_out, C_in) so the kernel does jnp.dot
    # with no in-kernel transpose.
    w2 = weight.reshape(C_out, Cin_g).astype(jnp.float32)
    wt = jnp.zeros((C_out, C_in), jnp.float32)
    for g in range(groups):
        wt = wt.at[g * Cout_g:(g + 1) * Cout_g,
                   g * Cin_g:(g + 1) * Cin_g].set(w2[g * Cout_g:(g + 1) * Cout_g])

    # Merge gamma/beta into one small input to cut per-step DMA descriptors.
    gb = jnp.stack([gamma.astype(jnp.float32), beta.astype(jnp.float32)], axis=1)

    if l_tile is None:
        l_tile = _choose_l_tile(L, C_in, C_out, vmem_budget_bytes)
    assert L % l_tile == 0 and (l_tile == L or l_tile % 128 == 0)
    n_l = L // l_tile

    kernel = functools.partial(_fused_kernel, count=float(N * L), eps=BN_EPS)

    step_bytes = 4 * (C_in * l_tile + C_out * l_tile + C_out * C_in + 2 * C_out)
    vmem_limit = int(min(64 * 1024 * 1024, max(32 * 1024 * 1024, 8 * step_bytes)))

    return pl.pallas_call(
        kernel,
        out_shape=jax.ShapeDtypeStruct((N, C_out, L), x.dtype),
        grid_spec=pltpu.PrefetchScalarGridSpec(
            num_scalar_prefetch=0,
            grid=(2, N, n_l),                       # (phase, batch tile, length tile)
            in_specs=[
                pl.BlockSpec((1, C_in, l_tile), lambda p, n, l: (n, 0, l)),
                pl.BlockSpec((C_out, C_in), lambda p, n, l: (0, 0)),
                pl.BlockSpec((C_out, 2), lambda p, n, l: (0, 0)),
            ],
            # Phase 0 never writes the output; mapping every phase-0 step to block (0,0,0)
            # keeps the revisit pattern consecutive and avoids flushing garbage to HBM.
            out_specs=pl.BlockSpec((1, C_out, l_tile),
                                   lambda p, n, l: (n * p, 0, l * p)),
            scratch_shapes=[
                pltpu.VMEM((C_out, 1), jnp.float32),   # per-channel sum
                pltpu.VMEM((C_out, 1), jnp.float32),   # per-channel sum of squares
                pltpu.VMEM((C_out, 1), jnp.float32),   # scale = gamma * rstd
                pltpu.VMEM((C_out, 1), jnp.float32),   # shift = beta - mean * scale
            ],
        ),
        compiler_params=pltpu.CompilerParams(
            # stats accumulator carries across every grid step -> all axes sequential
            dimension_semantics=("arbitrary", "arbitrary", "arbitrary"),
            vmem_limit_bytes=vmem_limit,
        ),
    )(x, wt, gb)


def reference_forward(x, weight, bias, gamma, beta, *, groups):
    """Pure-JAX reference of the PyTorch forward (training-mode BN), bias included."""
    N, C_in, L = x.shape
    C_out = weight.shape[0]
    Cin_g = C_in // groups
    Cout_g = C_out // groups
    w = weight.reshape(C_out, Cin_g)
    xs = x.reshape(N, groups, Cin_g, L)
    ws = w.reshape(groups, Cout_g, Cin_g)
    y = jnp.einsum("ngcl,goc->ngol", xs, ws).reshape(N, C_out, L) + bias[None, :, None]
    mean = jnp.mean(y, axis=(0, 2), keepdims=True)
    var = jnp.mean((y - mean) ** 2, axis=(0, 2), keepdims=True)
    y = (y - mean) / jnp.sqrt(var + BN_EPS)
    y = y * gamma[None, :, None] + beta[None, :, None]
    return jnp.maximum(y, 0.0)


def _make_inputs(key, N, C_in, C_out, L, groups):
    kx, kw, kb, kg, kbe = jax.random.split(key, 5)
    x = jax.random.normal(kx, (N, C_in, L), dtype=jnp.float32)
    weight = jax.random.normal(kw, (C_out, C_in // groups, 1), dtype=jnp.float32) * 0.2
    bias = jax.random.normal(kb, (C_out,), dtype=jnp.float32) * 0.1
    gamma = 1.0 + 0.1 * jax.random.normal(kg, (C_out,), dtype=jnp.float32)
    beta = 0.1 * jax.random.normal(kbe, (C_out,), dtype=jnp.float32)
    return x, weight, bias, gamma, beta


if __name__ == "__main__":
    # TODO(synk): nn.Dropout branch is disabled by default (dropout=False); not implemented.

    # Small shapes consistent with the module: batch=2, in=16, out=16, length=16, groups=4.
    N, C_in, C_out, L, groups = 2, 16, 16, 16, 4
    x, w, b, g, be = _make_inputs(jax.random.PRNGKey(0), N, C_in, C_out, L, groups)
    out = jax.block_until_ready(group_conv1x1_block(x, w, b, g, be, groups=groups))
    ref = reference_forward(x, w, b, g, be, groups=groups)
    assert out.shape == (N, C_out, L)
    assert jnp.allclose(out, ref, atol=2e-4, rtol=2e-4), "mismatch vs reference (small)"

    # Also exercise the L-tiled streaming-BN path (lane-dense 128-wide tiles).
    N2, C2i, C2o, L2, g2 = 2, 32, 32, 256, 4
    x2, w2, b2, gm2, be2 = _make_inputs(jax.random.PRNGKey(1), N2, C2i, C2o, L2, g2)
    out2 = jax.block_until_ready(
        group_conv1x1_block(x2, w2, b2, gm2, be2, groups=g2, l_tile=128))
    ref2 = reference_forward(x2, w2, b2, gm2, be2, groups=g2)
    assert out2.shape == (N2, C2o, L2)
    assert jnp.allclose(out2, ref2, atol=2e-4, rtol=2e-4), "mismatch vs reference (tiled)"

    print("KERNEL_OK")
</pallas_src>

<mosaic_0001>
module attributes {stable_mosaic.version = 11 : i64} {
  func.func @_fused_kernel(%arg0: i32, %arg1: i32, %arg2: i32, %arg3: memref<1x16x16xf32, #tpu.memory_space<vmem>>, %arg4: memref<16x16xf32, #tpu.memory_space<vmem>>, %arg5: memref<16x2xf32, #tpu.memory_space<vmem>>, %arg6: memref<1x16x16xf32, #tpu.memory_space<vmem>>, %arg7: memref<16x1xf32, #tpu.memory_space<vmem>>, %arg8: memref<16x1xf32, #tpu.memory_space<vmem>>, %arg9: memref<16x1xf32, #tpu.memory_space<vmem>>, %arg10: memref<16x1xf32, #tpu.memory_space<vmem>>) attributes {dimension_semantics = [#tpu.dimension_semantics<arbitrary>, #tpu.dimension_semantics<arbitrary>, #tpu.dimension_semantics<arbitrary>], iteration_bounds = array<i64: 2, 2, 1>, scalar_prefetch = 0 : i64, scratch_operands = 4 : i64, tpu.core_type = #tpu.core_type<tc>, window_params = [{transform_indices = @transform_0, window_bounds = array<i64: 1, 16, 16>}, {pipeline_mode = #tpu.pipeline_mode<synchronous>, transform_indices = @transform_1, window_bounds = array<i64: 16, 16>}, {pipeline_mode = #tpu.pipeline_mode<synchronous>, transform_indices = @transform_2, window_bounds = array<i64: 16, 2>}, {transform_indices = @transform_3, window_bounds = array<i64: 1, 16, 16>}]} {
    %c0_i32 = arith.constant 0 : i32
    %0 = arith.cmpi eq, %arg0, %c0_i32 : i32
    %c0_i32_0 = arith.constant 0 : i32
    %1 = arith.cmpi eq, %arg1, %c0_i32_0 : i32
    %c0_i32_1 = arith.constant 0 : i32
    %2 = arith.cmpi eq, %arg2, %c0_i32_1 : i32
    %3 = arith.andi %1, %2 : i1
    %4 = arith.andi %0, %3 : i1
    %5 = arith.extui %4 : i1 to i32
    %c0_i32_2 = arith.constant 0 : i32
    %6 = arith.cmpi ne, %5, %c0_i32_2 : i32
    scf.if %6 {
      %cst_14 = arith.constant 0.000000e+00 : f32
      %24 = vector.broadcast %cst_14 : f32 to vector<16x1xf32>
      %c0_15 = arith.constant 0 : index
      %c0_16 = arith.constant 0 : index
      %25 = vector.load %arg7[%c0_15, %c0_16] : memref<16x1xf32, #tpu.memory_space<vmem>>, vector<16x1xf32>
      tpu.vector_store %arg7[%c0_15, %c0_16], %24 {strides = array<i32>} : memref<16x1xf32, #tpu.memory_space<vmem>>, vector<16x1xf32>,
      %cst_17 = arith.constant 0.000000e+00 : f32
      %26 = vector.broadcast %cst_17 : f32 to vector<16x1xf32>
      %c0_18 = arith.constant 0 : index
      %c0_19 = arith.constant 0 : index
      %27 = vector.load %arg8[%c0_18, %c0_19] : memref<16x1xf32, #tpu.memory_space<vmem>>, vector<16x1xf32>
      tpu.vector_store %arg8[%c0_18, %c0_19], %26 {strides = array<i32>} : memref<16x1xf32, #tpu.memory_space<vmem>>, vector<16x1xf32>,
    } else {
    }
    %c0 = arith.constant 0 : index
    %c0_3 = arith.constant 0 : index
    %c0_4 = arith.constant 0 : index
    %7 = vector.load %arg3[%c0, %c0_3, %c0_4] : memref<1x16x16xf32, #tpu.memory_space<vmem>>, vector<1x16x16xf32>
    %8 = vector.shape_cast %7 : vector<1x16x16xf32> to vector<16x16xf32>
    %c0_5 = arith.constant 0 : index
    %c0_6 = arith.constant 0 : index
    %9 = vector.load %arg4[%c0_5, %c0_6] : memref<16x16xf32, #tpu.memory_space<vmem>>, vector<16x16xf32>
    %cst = arith.constant dense<0.000000e+00> : vector<16x16xf32>
    %10 = tpu.matmul %9, %8, %cst {dimension_numbers = #tpu.dot_dimension_numbers<[1], [0], [0], [1], [0, 0, 1, 1], [], []>} : vector<16x16xf32>, vector<16x16xf32>, vector<16x16xf32> -> vector<16x16xf32>
    %c0_i32_7 = arith.constant 0 : i32
    %11 = arith.cmpi eq, %arg0, %c0_i32_7 : i32
    %12 = arith.extui %11 : i1 to i32
    %c0_i32_8 = arith.constant 0 : i32
    %13 = arith.cmpi ne, %12, %c0_i32_8 : i32
    scf.if %13 {
      %c0_14 = arith.constant 0 : index
      %c0_15 = arith.constant 0 : index
      %24 = vector.load %arg7[%c0_14, %c0_15] : memref<16x1xf32, #tpu.memory_space<vmem>>, vector<16x1xf32>
      %cst_16 = arith.constant dense<0.000000e+00> : vector<16xf32>
      %25 = vector.multi_reduction <add>, %10, %cst_16 [1] : vector<16x16xf32> to vector<16xf32>
      %26 = vector.shape_cast %25 : vector<16xf32> to vector<16x1xf32>
      %27 = arith.addf %24, %26 : vector<16x1xf32>
      %c0_17 = arith.constant 0 : index
      %c0_18 = arith.constant 0 : index
      %28 = vector.load %arg7[%c0_17, %c0_18] : memref<16x1xf32, #tpu.memory_space<vmem>>, vector<16x1xf32>
      tpu.vector_store %arg7[%c0_17, %c0_18], %27 {strides = array<i32>} : memref<16x1xf32, #tpu.memory_space<vmem>>, vector<16x1xf32>,
      %c0_19 = arith.constant 0 : index
      %c0_20 = arith.constant 0 : index
      %29 = vector.load %arg8[%c0_19, %c0_20] : memref<16x1xf32, #tpu.memory_space<vmem>>, vector<16x1xf32>
      %30 = arith.mulf %10, %10 : vector<16x16xf32>
      %cst_21 = arith.constant dense<0.000000e+00> : vector<16xf32>
      %31 = vector.multi_reduction <add>, %30, %cst_21 [1] : vector<16x16xf32> to vector<16xf32>
      %32 = vector.shape_cast %31 : vector<16xf32> to vector<16x1xf32>
      %33 = arith.addf %29, %32 : vector<16x1xf32>
      %c0_22 = arith.constant 0 : index
      %c0_23 = arith.constant 0 : index
      %34 = vector.load %arg8[%c0_22, %c0_23] : memref<16x1xf32, #tpu.memory_space<vmem>>, vector<16x1xf32>
      tpu.vector_store %arg8[%c0_22, %c0_23], %33 {strides = array<i32>} : memref<16x1xf32, #tpu.memory_space<vmem>>, vector<16x1xf32>,
    } else {
    }
    %c0_i32_9 = arith.constant 0 : i32
    %14 = arith.cmpi eq, %arg0, %c0_i32_9 : i32
    %c1_i32 = arith.constant 1 : i32
    %15 = arith.cmpi eq, %arg1, %c1_i32 : i32
    %c0_i32_10 = arith.constant 0 : i32
    %16 = arith.cmpi eq, %arg2, %c0_i32_10 : i32
    %17 = arith.andi %15, %16 : i1
    %18 = arith.andi %14, %17 : i1
    %19 = arith.extui %18 : i1 to i32
    %c0_i32_11 = arith.constant 0 : i32
    %20 = arith.cmpi ne, %19, %c0_i32_11 : i32
    scf.if %20 {
      %c0_14 = arith.constant 0 : index
      %c0_15 = arith.constant 0 : index
      %24 = vector.load %arg7[%c0_14, %c0_15] : memref<16x1xf32, #tpu.memory_space<vmem>>, vector<16x1xf32>
      %cst_16 = arith.constant 3.125000e-02 : f32
      %25 = vector.broadcast %cst_16 : f32 to vector<16x1xf32>
      %26 = arith.mulf %24, %25 : vector<16x1xf32>
      %c0_17 = arith.constant 0 : index
      %c0_18 = arith.constant 0 : index
      %27 = vector.load %arg8[%c0_17, %c0_18] : memref<16x1xf32, #tpu.memory_space<vmem>>, vector<16x1xf32>
      %cst_19 = arith.constant 3.125000e-02 : f32
      %28 = vector.broadcast %cst_19 : f32 to vector<16x1xf32>
      %29 = arith.mulf %27, %28 : vector<16x1xf32>
      %30 = arith.mulf %26, %26 : vector<16x1xf32>
      %31 = arith.subf %29, %30 : vector<16x1xf32>
      %cst_20 = arith.constant 0.000000e+00 : f32
      %32 = vector.broadcast %cst_20 : f32 to vector<16x1xf32>
      %33 = arith.maximumf %31, %32 : vector<16x1xf32>
      %cst_21 = arith.constant 9.99999974E-6 : f32
      %34 = vector.broadcast %cst_21 : f32 to vector<16x1xf32>
      %35 = arith.addf %33, %34 : vector<16x1xf32>
      %36 = math.rsqrt %35 : vector<16x1xf32>
      %c0_22 = arith.constant 0 : index
      %c0_23 = arith.constant 0 : index
      %37 = vector.load %arg5[%c0_22, %c0_23] : memref<16x2xf32, #tpu.memory_space<vmem>>, vector<16x1xf32>
      %c0_24 = arith.constant 0 : index
      %c1 = arith.constant 1 : index
      %38 = vector.load %arg5[%c0_24, %c1] : memref<16x2xf32, #tpu.memory_space<vmem>>, vector<16x1xf32>
      %39 = arith.mulf %37, %36 : vector<16x1xf32>
      %c0_25 = arith.constant 0 : index
      %c0_26 = arith.constant 0 : index
      %40 = vector.load %arg9[%c0_25, %c0_26] : memref<16x1xf32, #tpu.memory_space<vmem>>, vector<16x1xf32>
      tpu.vector_store %arg9[%c0_25, %c0_26], %39 {strides = array<i32>} : memref<16x1xf32, #tpu.memory_space<vmem>>, vector<16x1xf32>,
      %41 = arith.mulf %26, %37 : vector<16x1xf32>
      %42 = arith.mulf %41, %36 : vector<16x1xf32>
      %43 = arith.subf %38, %42 : vector<16x1xf32>
      %c0_27 = arith.constant 0 : index
      %c0_28 = arith.constant 0 : index
      %44 = vector.load %arg10[%c0_27, %c0_28] : memref<16x1xf32, #tpu.memory_space<vmem>>, vector<16x1xf32>
      tpu.vector_store %arg10[%c0_27, %c0_28], %43 {strides = array<i32>} : memref<16x1xf32, #tpu.memory_space<vmem>>, vector<16x1xf32>,
    } else {
    }
    %c1_i32_12 = arith.constant 1 : i32
    %21 = arith.cmpi eq, %arg0, %c1_i32_12 : i32
    %22 = arith.extui %21 : i1 to i32
    %c0_i32_13 = arith.constant 0 : i32
    %23 = arith.cmpi ne, %22, %c0_i32_13 : i32
    scf.if %23 {
      %c0_14 = arith.constant 0 : index
      %c0_15 = arith.constant 0 : index
      %24 = vector.load %arg9[%c0_14, %c0_15] : memref<16x1xf32, #tpu.memory_space<vmem>>, vector<16x1xf32>
      %25 = vector.broadcast %24 : vector<16x1xf32> to vector<16x16xf32>
      %26 = arith.mulf %10, %25 : vector<16x16xf32>
      %c0_16 = arith.constant 0 : index
      %c0_17 = arith.constant 0 : index
      %27 = vector.load %arg10[%c0_16, %c0_17] : memref<16x1xf32, #tpu.memory_space<vmem>>, vector<16x1xf32>
      %28 = vector.broadcast %27 : vector<16x1xf32> to vector<16x16xf32>
      %29 = arith.addf %26, %28 : vector<16x16xf32>
      %cst_18 = arith.constant 0.000000e+00 : f32
      %30 = vector.broadcast %cst_18 : f32 to vector<16x16xf32>
      %31 = arith.maximumf %29, %30 : vector<16x16xf32>
      %c0_19 = arith.constant 0 : index
      %c0_20 = arith.constant 0 : index
      %c0_21 = arith.constant 0 : index
      %32 = vector.load %arg6[%c0_19, %c0_20, %c0_21] : memref<1x16x16xf32, #tpu.memory_space<vmem>>, vector<1x16x16xf32>
      %33 = vector.shape_cast %32 : vector<1x16x16xf32> to vector<16x16xf32>
      %34 = vector.shape_cast %31 : vector<16x16xf32> to vector<1x16x16xf32>
      tpu.vector_store %arg6[%c0_19, %c0_20, %c0_21], %34 {strides = array<i32>} : memref<1x16x16xf32, #tpu.memory_space<vmem>>, vector<1x16x16xf32>,
    } else {
    }
    return
  }
  func.func @transform_0(%arg0: i32, %arg1: i32, %arg2: i32) -> (i32, i32, i32) {
    %c0_i32 = arith.constant 0 : i32
    %c0_i32_0 = arith.constant 0 : i32
    return %arg1, %c0_i32, %arg2 : i32, i32, i32
  }
  func.func @transform_1(%arg0: i32, %arg1: i32, %arg2: i32) -> (i32, i32) {
    %c0_i32 = arith.constant 0 : i32
    %c0_i32_0 = arith.constant 0 : i32
    %c0_i32_1 = arith.constant 0 : i32
    return %c0_i32, %c0_i32_0 : i32, i32
  }
  func.func @transform_2(%arg0: i32, %arg1: i32, %arg2: i32) -> (i32, i32) {
    %c0_i32 = arith.constant 0 : i32
    %c0_i32_0 = arith.constant 0 : i32
    %c0_i32_1 = arith.constant 0 : i32
    return %c0_i32, %c0_i32_0 : i32, i32
  }
  func.func @transform_3(%arg0: i32, %arg1: i32, %arg2: i32) -> (i32, i32, i32) {
    %0 = arith.muli %arg1, %arg0 : i32
    %1 = arith.muli %arg2, %arg0 : i32
    %c0_i32 = arith.constant 0 : i32
    %c0_i32_0 = arith.constant 0 : i32
    return %0, %c0_i32, %1 : i32, i32, i32
  }
}

</mosaic_0001>

<bundles_post_ra>
// kernel: tpu_custom_call.1
= control target key start
LH: loop header
LB: loop body
LE: loop exit
PB: predicated region body
PF: predicated region fallthrough
CT: control target
= control target key end

     0   :  { %8 = vsyncpa [#allocation7], 0  ;;  %s1128_s0 = inlined_call_operand.hbm [shape: f32[2,16,16], index: 0, kind: input, shape index: {}]   ;;  %s1129_s1 = inlined_call_operand.vmem [shape: f32[16,16], index: 1, kind: input, shape index: {}]   ;;  %s1130_s2 = inlined_call_operand.vmem [shape: f32[16,2], index: 2, kind: input, shape index: {}]   ;;  %s1131_s3 = inlined_call_operand.hbm [shape: f32[2,16,16], index: 3, kind: output, shape index: {}]  }
   0x1   :  { %10 = vsyncpa [#allocation7 + $0x1], 0 }
   0x2   :  { %11 = vsyncpa [#allocation8], 0 }
   0x3   :  { %13 = vsyncpa [#allocation8 + $0x1], 0  ;;  %s881_s12 = smov 0   ;;  %s883_s13 = smov 0  }
   0x4   :  { %s885_s14 = smov 0   ;;  %s887_s15 = smov 0  }
   0x5   :  { %s889_s16 = smov 0   ;;  %s891_s17 = smov 0  }
   0x6   :  { %s893_s18 = smov 0   ;;  %s895_s19 = smov 0  }
   0x7   :  { %s897_s20 = smov 0   ;;  %s899_s21 = smov 0  }
   0x8   :  { %s901_s22 = smov 0  }
   0x9 LB: > { %1136 = sst [smem:[#allocation12_spill]] %s841_s20  ;;  %s549_s23 = sadd.s32 4294967295, %s849_s22   ;;  %s849_s22 = sphi %s901_s22, %s19_s22   ;;  %s845_s21 = sphi %s899_s21, %s1148_s21   ;;  %s841_s20 = sphi %s897_s20, %s1147_s20   ;;  %s837_s19 = sphi %s895_s19, %s1146_s19   ;;  %s833_s18 = sphi %s893_s18, %s1145_s18   ;;  %s829_s17 = sphi %s891_s17, %s1154_s17   ;;  %s825_s16 = sphi %s889_s16, %s1153_s16   ;;  %s821_s15 = sphi %s887_s15, %s1152_s15   ;;  %s817_s14 = sphi %s885_s14, %s1151_s14   ;;  %s813_s13 = sphi %s883_s13, %s1150_s13   ;;  %s809_s12 = sphi %s881_s12, %s1149_s12  }
   0xa   : > { %1137 = sst [smem:[#allocation13_spill]] %s845_s21  ;;  %s550_s24 = sadd.s32 4294967294, %s849_s22  }
   0xb   : > { %s34_s25 = sadd.s32 1, %s841_s20  ;;  %s38_s26 = sadd.s32 1, %s845_s21 }
   0xc   : > { %p36_p0 = scmp.ge.s32.totalorder %s34_s25, 2  ;;  %s47_s27 = sadd.s32 1, %s829_s17 }
   0xd   : > { %p54_p1 = scmp.ne.s32.totalorder %s829_s17, %s825_s16  ;;  %p55_p2 = scmp.eq.s32.totalorder %s849_s22, 0 }
   0xe   : > { %s1156_s25 = smov (%p36_p0, %s34_s25), 0  ;;  %s1158_s26 = smov (!%p36_p0, %s38_s26), %s845_s21 }
   0xf   : > { %1138 = sst [smem:[#allocation14_spill]] %s1156_s25  ;;  %s42_s28 = ssub.s32 %s841_s20, %s1156_s25 }
  0x10   : > { %p947_p3 = por %p55_p2, %p54_p1  ;;  %p40_p4 = scmp.ge.s32.totalorder %s1158_s26, 2 }
  0x11   : > { %p45_p5 = scmp.eq.s32.totalorder %s42_s28, 0  ;;  %p60_p6 = scmp.ne.s32.totalorder %s825_s16, %s821_s15 }
  0x12   : > { %p61_p7 = scmp.eq.s32.totalorder %s549_s23, 0  ;;  %s1160_s26 = smov (%p40_p4, %s1158_s26), 0 }
  0x13   : > { %1140 = sst [smem:[#allocation15_spill]] %s1160_s26  ;;  %s112_s5 = smul.u32 %s841_s20, %s845_s21 }
  0x14   : > { %s955_s30 = scalar_select %p45_p5, %s829_s17, %s47_s27  }
  0x15   : > { %p957_p8 = por %p61_p7, %p60_p6  ;;  %s114_s6 = smul.u32 %s1160_s26, %s1156_s25 }
  0x16   : > { %s121_s7 = sadd.s32 1, %s817_s14  ;;  %p131_p9 = scmp.ne.s32.totalorder %s817_s14, %s813_s13 }
  0x17   : > { %p132_p10 = scmp.eq.s32.totalorder %s549_s23, 3  ;;  %s116_s8 = ssub.s32 %s112_s5, %s114_s6 }
  0x18   : > { %p137_p11 = scmp.ne.s32.totalorder %s813_s13, %s809_s12  ;;  %p119_p12 = scmp.eq.s32.totalorder %s116_s8, 0 }
  0x19   : > { %p970_p13 = por %p132_p10, %p131_p9  ;;  %p138_p0 = scmp.eq.s32.totalorder %s550_s24, 3 }
  0x1a   : > { %s975_s10 = scalar_select %p119_p12, %s817_s14, %s121_s7  }
  0x1b   : > { %p977_p1 = por %p138_p0, %p137_p11  ;;  %p597_p2 = scmp.lt.s32.totalorder %s849_s22, 4 }
  0x1c   : > { %s164_s15 = sand.u32 1, %s829_s17   ;;  %s570_s27 = sshll.u32 %s841_s20, 8 }
  0x1d   : > { %s553_s28 = sshll.u32 %s164_s15, 4  ;;  %s175_s5 = scalar_lea.hbm %s1128_s0, %s570_s27 }
  0x1e   : > { %s168_s6 = scalar_lea.vmem [#allocation6], %s553_s28  ;;  %p989_p4 = pnand %p597_p2, %p947_p3 }
  0x1f   : > { %s176_s8 = sshll.u32 %s168_s6, 4  ;;  %s165_s24 = scalar_lea.sflag [#allocation7], %s164_s15  ;;  %s177_s8 = int_to_ptr.vmem [resolvable:$true] %s176_s8 }
  0x20   : > { %p703_p5 = pneg %p989_p4  ;;  %s714_s7 = scalar_lea.vmem %s177_s8, 256 }
  0x21   : > { %p715_p6 = scmp.ne.s32.totalorder %s177_s8, %s714_s7  ;;  %s851_s21 = smov [#allocation6]  }
  0x22   : > { %s719_s20 = sshll.u32 %s851_s21, 4  ;;  %s720_s20 = int_to_ptr.vmem [resolvable:$false] %s719_s20 }
  0x23   : > { %p717_p7 = pnand %p715_p6, %p703_p5  ;;  %s721_s26 = scalar_lea.vmem %s720_s20, 512 }
  0x24   : > { %p722_p10 = scmp.lt.s32.totalorder %s177_s8, %s720_s20  ;;  %p723_p11 = scmp.lt.s32.totalorder %s721_s26, %s714_s7 }
  0x25   : > { %p718_p9 = pneg %p717_p7 }
  0x26   : > { %p724_p12 = por %p723_p11, %p722_p10 }
  0x28   : > { %p725_p3 = pnand %p724_p12, %p718_p9 }
  0x2a   : > { %728 = shalt.err (!%p725_p3)
}
  0x2b   : > { %s852_s29 = smov 128   ;;  %s853_s15 = smov 8  }
  0x2c   : > { %592 = dma.hbm_to_vmem [thread:$0]  (!%p989_p4), %s175_s5, 256, %s177_s8, %s165_s24, %s852_s29, %s852_s29, %s853_s15  }
  0x2d   : > { %p556_p0 = scmp.ge.s32.totalorder %s849_s22, 1  ;;  %p184_p2 = scmp.lt.s32.totalorder %s849_s22, 5 }
  0x2f   : > { %p185_p5 = pnand %p556_p0, %p184_p2 }
  0x30   : > { %s190_s21 = sand.u32 (!%p185_p5), 1, %s825_s16  }
  0x31   : > { %188 = sbr.rel (%p185_p5) target bundleno = 858 (0x35a), region = 32  ;;  %s557_s27 = sshll.u32 (!%p185_p5), %s190_s21, 4 }
  0x32   : > { %s191_s20 = scalar_lea.sflag (!%p185_p5), [#allocation7], %s190_s21  ;;  %s194_s28 = scalar_lea.vmem (!%p185_p5), [#allocation6], %s557_s27 }
  0x36   : > { %800 = dma.done.wait (%p957_p8), %s191_s20, 256  }
  0x37   : > { %802 = vsyncadd (%p957_p8), %s191_s20, 4294967040  ;;  %s214_s25 = sand.u32 1, %s813_s13   ;;  %p219_p4 = scmp.eq.s32.totalorder %s837_s19, 0 }
  0x38   : > { %s558_s23 = sshll.u32 %s214_s25, 4  ;;  %p220_p6 = scmp.eq.s32.totalorder %s833_s18, 0 }
  0x39   : > { %s1011_s5 = scalar_lea.vmem [#allocation9], %s558_s23 }
  0x3a   : > { %p224_p7 = pnand %p220_p6, %p219_p4 }
  0x3c   : > { %227 = sbr.rel (%p224_p7) target bundleno = 68 (0x44), region = 40 }
  0x41   : > { %vm228_vm0 = vcmask 7168   ;;  %v854_v0 = vmov 0.0  }
  0x42   : > { %229 = vst.msk [vmem:[#allocation2] sm:$0xff] %vm228_vm0, %v854_v0  ;;  %230 = vst.msk [vmem:[#allocation2 + $0x8] sm:$0xff] %vm228_vm0, %v854_v0 }
  0x43   : > { %231 = vst.msk [vmem:[#allocation3] sm:$0xff] %vm228_vm0, %v854_v0  ;;  %232 = vst.msk [vmem:[#allocation3 + $0x8] sm:$0xff] %vm228_vm0, %v854_v0 }
  0x44 PF: > { %v234_v1 = vld [vmem:[%s194_s28 + $0x8] sm:$0xff]  ;;  %v233_v2 = vld [vmem:[%s194_s28] sm:$0xff]  ;;  %vm237_vm1 = vcmask 130048   ;;  %p562_p8 = scmp.ne.s32.totalorder %s837_s19, 0 }
  0x45   : > { %v235_v3 = vld [vmem:[%s1129_s1] sm:$0xff]  ;;  %578 = vmatprep.subr.mxu0 %v234_v1  ;;  %v236_v4 = vld [vmem:[%s1129_s1 + $0x8] sm:$0xff] }
  0x46   : > { %582 = vmatprep.mubr.msk.f32.mxu0 %vm237_vm1, %v235_v3  ;;  %579 = vmatpush3.msra.mxu0 %v234_v1 }
  0x47   : > { %580 = vmatprep.subr.mxu0 %v233_v2 }
  0x48   : > { %581 = vmatpush3.msra.mxu0 %v233_v2 }
  0x49   : > { %583 = vmatmul.mubr.msk.f32.vlgmr.msra.gmra.mxu0 %vm237_vm1, %v236_v4 }
 0x107   : > { %321 = sbr.rel (%p562_p8) target bundleno = 416 (0x1a0), region = 44 }
 0x109   : > { %v1021_v5 = vpop.f32.mrf.mxu0 }
 0x10b   : > { %v1023_v6 = vpop.f32.mrf.mxu0 }
 0x10c   : > { %v337_v7 = vmul.f32 %v1023_v6, %v1023_v6  ;;  %v324_v8 = vsel %vm237_vm1, %v1023_v6, 0.0  ;;  %v338_v9 = vmul.f32 %v1021_v5, %v1021_v5  ;;  %v327_v11 = vsel %vm237_vm1, %v1021_v5, 0.0  ;;  %v322_v13 = vld [vmem:[#allocation2] sm:$0xff]  ;;  %v335_v14 = vld [vmem:[#allocation3] sm:$0xff]  ;;  %v323_v18 = vld [vmem:[#allocation2 + $0x8] sm:$0xff] }
 0x10d   : > { %325 = vadd.xlane.f32.xlu0 %v324_v8  ;;  %vm332_vm2 = vcmask 7168   ;;  %v336_v20 = vld [vmem:[#allocation3 + $0x8] sm:$0xff] }
 0x10e   : > { %v339_v10 = vsel %vm237_vm1, %v337_v7, 0.0  ;;  %v342_v12 = vsel %vm237_vm1, %v338_v9, 0.0 }
 0x10f   : > { %340 = vadd.xlane.f32.xlu1 %v339_v10 }
 0x111   : > { %328 = vadd.xlane.f32.xlu0 %v327_v11 }
 0x113   : > { %343 = vadd.xlane.f32.xlu1 %v342_v12 }
 0x196   : > { %v326_v15 = vpop.xlane.xlu0 %325 }
 0x197   : > { %v330_v16 = vadd.f32 %v326_v15, %v322_v13 }
 0x198   : > { %v341_v17 = vpop.xlane.xlu1 %340 }
 0x199   : > { %v345_v19 = vadd.f32 %v341_v17, %v335_v14  ;;  %333 = vst.msk [vmem:[#allocation2] sm:$0xff] %vm332_vm2, %v330_v16 }
 0x19a   : > { %v329_v21 = vpop.xlane.xlu0 %328 }
 0x19b   : > { %347 = vst.msk [vmem:[#allocation3] sm:$0xff] %vm332_vm2, %v345_v19  ;;  %v331_v22 = vadd.f32 %v329_v21, %v323_v18 }
 0x19c   : > { %v344_v23 = vpop.xlane.xlu1 %343 }
 0x19d   : > { %v346_v24 = vadd.f32 %v344_v23, %v336_v20  ;;  %334 = vst.msk [vmem:[#allocation2 + $0x8] sm:$0xff] %vm332_vm2, %v331_v22 }
 0x19f   : > { %348 = vst.msk [vmem:[#allocation3 + $0x8] sm:$0xff] %vm332_vm2, %v346_v24 }
 0x1a0 PF: > { %p349_p9 = scmp.eq.s32.totalorder %s833_s18, 1 }
 0x1a2   : > { %p352_p10 = pnand %p349_p9, %p219_p4 }
 0x1a3   : > { %s855_s21 = smov (!%p352_p10), 1   ;;  %s856_s27 = smov (!%p352_p10), 127  }
 0x1a4   : > { %355 = sbr.rel (%p352_p10) target bundleno = 689 (0x2b1), region = 48 }
 0x1a9   : > { %v356_v25 = vld [vmem:[#allocation2] sm:$0xff]  ;;  %v360_v26 = vld [vmem:[#allocation3] sm:$0xff]  ;;  %v357_v29 = vld [vmem:[#allocation2 + $0x8] sm:$0xff]  ;;  %vm378_vm3 = vcmask 7168  }
 0x1aa   : > { %v358_v27 = vmul.f32 0.03125, %v356_v25  ;;  %v362_v28 = vmul.f32 0.03125, %v360_v26  ;;  %v361_v30 = vld [vmem:[#allocation3 + $0x8] sm:$0xff]  ;;  %v359_v31 = vmul.f32 0.03125, %v357_v29  ;;  %v374_v41 = vld [vmem:[%s1130_s2] sm:$0xff]  ;;  %v375_v42 = vld [vmem:[%s1130_s2 + $0x8] sm:$0xff] }
 0x1ab   : > { %v363_v32 = vmul.f32 0.03125, %v361_v30 }
 0x1ac   : > { %v364_v33 = vmul.f32 %v358_v27, %v358_v27  ;;  %v365_v34 = vmul.f32 %v359_v31, %v359_v31  ;;  %v381_v43 = vmul.f32 %v374_v41, %v358_v27  ;;  %v382_v44 = vmul.f32 %v375_v42, %v359_v31 }
 0x1ae   : > { %v366_v35 = vsub.f32 %v362_v28, %v364_v33  ;;  %v367_v36 = vsub.f32 %v363_v32, %v365_v34 }
 0x1b0   : > { %v368_v37 = vmax.f32 %v366_v35, 0.0  ;;  %v369_v38 = vmax.f32 %v367_v36, 0.0 }
 0x1b2   : > { %v370_v39 = vadd.f32 1e-05, %v368_v37  ;;  %v371_v40 = vadd.f32 1e-05, %v369_v38 }
 0x1b4   : > { %695 = vrsqrt.f32 %v370_v39 }
 0x1b5   : > { %697 = vrsqrt.f32 %v371_v40 }
 0x1c1   : > { %v696_v45 = vpop.eup %695 }
 0x1c2   : > { %v698_v46 = vpop.eup %697  ;;  %v383_v47 = vmul.f32 %v696_v45, %v381_v43  ;;  %v376_v48 = vmul.f32 %v696_v45, %v374_v41 }
 0x1c3   : > { %v377_v49 = vmul.f32 %v698_v46, %v375_v42  ;;  %v384_v50 = vmul.f32 %v698_v46, %v382_v44 }
 0x1c4   : > { %387 = vrot.lane.b32.xlu0 %v383_v47, %s855_s21  ;;  %379 = vst.msk [vmem:[#allocation4] sm:$0xff] %vm378_vm3, %v376_v48 }
 0x1c5   : > { %380 = vst.msk [vmem:[#allocation4 + $0x8] sm:$0xff] %vm378_vm3, %v377_v49 }
 0x1c8   : > { %389 = vrot.lane.b32.xlu0 %v384_v50, %s855_s21 }
 0x236   : > { %v388_v51 = vpop.permute.xlu0 %387 }
 0x237   : > { %v393_v52 = vsub.f32 %v374_v41, %v388_v51 }
 0x239   : > { %397 = vrot.lane.b32.xlu1 %v393_v52, %s856_s27 }
 0x23a   : > { %v390_v53 = vpop.permute.xlu0 %389 }
 0x23b   : > { %v394_v54 = vsub.f32 %v375_v42, %v390_v53 }
 0x23d   : > { %399 = vrot.lane.b32.xlu1 %v394_v54, %s856_s27 }
 0x2ab   : > { %v398_v55 = vpop.permute.xlu1 %397 }
 0x2ac   : > { %403 = vst.msk [vmem:[#allocation5] sm:$0xff] %vm378_vm3, %v398_v55 }
 0x2af   : > { %v400_v56 = vpop.permute.xlu1 %399 }
 0x2b0   : > { %404 = vst.msk [vmem:[#allocation5 + $0x8] sm:$0xff] %vm378_vm3, %v400_v56 }
 0x2b1 PF: > { %p564_p11 = scmp.ne.s32.totalorder %s837_s19, 1 }
 0x2b3   : > { %408 = sbr.rel (%p564_p11) target bundleno = 833 (0x341), region = 52 }
 0x2b8   : > { %v423_v57 = vld [vmem:[#allocation5] sm:$0xff]  ;;  %v409_v58 = vld [vmem:[#allocation4] sm:$0xff]  ;;  %v857_v59 = vmov 0   ;;  %v424_v60 = vld [vmem:[#allocation5 + $0x8] sm:$0xff] }
 0x2b9   : > { %700 = vset.pattern.permute.xlu1 %v857_v59  ;;  %699 = vset.pattern.permute.xlu0 %v857_v59  ;;  %v410_v61 = vld [vmem:[#allocation4 + $0x8] sm:$0xff] }
 0x2ba   : > { %427 = vperm.xlu1 %700, %v423_v57   ;;  %413 = vperm.xlu0 %699, %v409_v58  }
 0x2be   : > { %432 = vperm.xlu1 %700, %v424_v60   ;;  %418 = vperm.xlu0 %699, %v410_v61  }
 0x335   : > { %v428_v62 = vpop.permute.xlu1 %427  ;;  %v414_v63 = vpop.permute.xlu0 %413 }
 0x336   : > { %v421_v0 = vmul.f32 %v414_v63, %v1023_v6 }
 0x338   : > { %v435_v1 = vadd.f32 %v428_v62, %v421_v0 }
 0x339   : > { %v419_v2 = vpop.permute.xlu0 %418  ;;  %v433_v7 = vpop.permute.xlu1 %432 }
 0x33a   : > { %v437_v3 = vmax.f32 %v435_v1, 0.0  ;;  %v422_v4 = vmul.f32 %v1021_v5, %v419_v2 }
 0x33c   : > { %439 = vst.msk [vmem:[%s1011_s5] sm:$0xff] %vm237_vm1, %v437_v3  ;;  %v436_v8 = vadd.f32 %v433_v7, %v422_v4 }
 0x33e   : > { %v438_v9 = vmax.f32 %v436_v8, 0.0 }
 0x340   : > { %440 = vst.msk [vmem:[%s1011_s5 + $0x8] sm:$0xff] %vm237_vm1, %v438_v9 }
 0x341 PF: > { %s449_s20 = smul.u32 %s833_s18, %s837_s19  ;;  %s458_s28 = sshll.u32 %s1011_s5, 4  ;;  %s1059_s28 = int_to_ptr.vmem [resolvable:$true] %s458_s28 }
 0x342   : > { %s1068_s24 = scalar_lea.sflag [#allocation8], %s214_s25  ;;  %s729_s7 = scalar_lea.vmem %s1059_s28, 256 }
 0x343   : > { %s573_s23 = sshll.u32 %s449_s20, 8  ;;  %p730_p12 = scmp.ne.s32.totalorder %s1059_s28, %s729_s7 }
 0x344   : > { %s1064_s8 = scalar_lea.hbm %s1131_s3, %s573_s23  ;;  %s858_s18 = smov [#allocation9]  }
 0x345   : > { %p731_p3 = pnand %p730_p12, %p970_p13  ;;  %s733_s19 = sshll.u32 %s858_s18, 4  ;;  %s734_s19 = int_to_ptr.vmem [resolvable:$false] %s733_s19 }
 0x346   : > { %s735_s5 = scalar_lea.vmem %s734_s19, 512  ;;  %p736_p2 = scmp.lt.s32.totalorder %s1059_s28, %s734_s19 }
 0x347   : > { %p732_p0 = pneg %p731_p3  ;;  %p737_p5 = scmp.lt.s32.totalorder %s735_s5, %s729_s7 }
 0x349   : > { %p738_p4 = por %p737_p5, %p736_p2 }
 0x34b   : > { %p739_p6 = pnand %p738_p4, %p732_p0 }
 0x34d   : > { %742 = shalt.err (!%p739_p6)
}
 0x34e   : > { %s743_s25 = scalar_lea.hbm %s1064_s8, 256  ;;  %s747_s15 = scalar_lea.hbm %s1131_s3, 512 }
 0x34f   : > { %p744_p7 = scmp.ne.s32.totalorder %s1064_s8, %s743_s25  ;;  %p748_p10 = scmp.lt.s32.totalorder %s1064_s8, %s1131_s3 }
 0x350   : > { %p749_p11 = scmp.lt.s32.totalorder %s747_s15, %s743_s25 }
 0x351   : > { %p745_p8 = pnand %p744_p7, %p970_p13 }
 0x352   : > { %p750_p12 = por %p749_p11, %p748_p10 }
 0x353   : > { %p746_p9 = pneg %p745_p8 }
 0x355   : > { %p751_p3 = pnand %p750_p12, %p746_p9 }
 0x357   : > { %754 = shalt.err (!%p751_p3)
}
 0x358   : > { %s859_s20 = smov 128   ;;  %s860_s23 = smov 8  }
 0x359   : > { %587 = dma.vmem_to_hbm [thread:$0]  (%p970_p13), %s1059_s28, 256, %s1064_s8, %s1068_s24, %s859_s20, %s859_s20, %s860_s23  }
 0x35a PF: > { %p598_p0 = scmp.ge.s32.totalorder %s849_s22, 2  ;;  %s473_s4 = sand.u32 1, %s809_s12  }
 0x35b   : > { %s474_s6 = scalar_lea.sflag [#allocation8], %s473_s4 }
 0x35c   : > { %p594_p2 = pnand %p598_p0, %p977_p1 }
 0x35e   : > { %p595_p5 = pneg %p594_p2 }
 0x360   : > { %804 = dma.done.wait (%p595_p5), %s474_s6, 256  }
 0x361   : > { %806 = vsyncadd (%p595_p5), %s474_s6, 4294967040  ;;  %s19_s22 = sadd.s32 1, %s849_s22   ;;  %s1145_s18 = sld [smem:[#allocation12_spill]] }
 0x362   : > { %p16_p4 = scmp.ge.s32.totalorder %s19_s22, 6   ;;  %s1146_s19 = sld [smem:[#allocation13_spill]] }
 0x363   : > { %s1147_s20 = sld [smem:[#allocation14_spill]]  ;;  %s1149_s12 = smov %s813_s13 }
 0x364   : > { %s1148_s21 = sld [smem:[#allocation15_spill]]  ;;  %s1150_s13 = smov %s817_s14 }
 0x365   : > { %s1151_s14 = smov %s975_s10  ;;  %s1152_s15 = smov %s825_s16 }
 0x366   : > { %s1153_s16 = smov %s829_s17  ;;  %s1154_s17 = smov %s955_s30 }
 0x367   :  { %18 = sbr.rel (!%p16_p4) target bundleno = 9 (0x9), region = 93 }
 0x36c   :  { %479 = vsyncpa [#allocation7], 1 }
 0x36d   :  { %481 = vsyncpa [#allocation7 + $0x1], 1 }
 0x36e   :  { %482 = vsyncpa [#allocation8], 1 }
 0x36f   :  { %484 = vsyncpa [#allocation8 + $0x1], 1 }

</bundles_post_ra>
